<compile_context>
chip_gen: v6e
topology: v6e:2x2x1
jax: 0.10.0
libtpu: 0.0.40
codegen_flags: <defaults>
</compile_context>

<pallas_src>
import jax
import jax.numpy as jnp
from jax import lax
from jax.experimental import pallas as pl
from jax.experimental.pallas import tpu as pltpu


def _ilp_attn_loss_kernel(sn_ref, tn_ref, gtc_ref, pred_ref, out_ref):
    # pred arrives in native dtype (bf16 callers halve HBM traffic on v5e);
    # compute in f32 like the torch reference.
    pred = pred_ref[...].astype(jnp.float32)            # (Bt, TN, M)
    Bt, TN, M = pred.shape

    sn = sn_ref[...]                                     # (Bt, 1, 1) int32 valid rows
    tn = tn_ref[...]                                     # (Bt, 1, 1) int32 valid cols
    gtc = gtc_ref[...]                                   # (Bt, TN, 1) int32 gt col (-1: none)

    row0 = pl.program_id(1) * TN
    row_idx = row0 + lax.broadcasted_iota(jnp.int32, (1, TN, 1), 1)
    col_idx = lax.broadcasted_iota(jnp.int32, (1, 1, M), 2)
    row_ok = row_idx < sn                                # (Bt, TN, 1)
    col_ok = col_idx < tn                                # (Bt, 1,  M)

    # --- greedy per-row argmax (ILP_solver stand-in): single lane reduce ----
    # pred in [0,1] => its f32 bit pattern is order-preserving as int32.
    # Fold the first-index tie-break into the low ceil(log2(M)) mantissa bits
    # so max(key) both selects a unique column and encodes its index.
    kbits = max(1, (M - 1).bit_length())
    low_mask = (1 << kbits) - 1
    pbits = pltpu.bitcast(pred, jnp.int32)
    key = (pbits & jnp.int32(~low_mask)) | (jnp.int32(M - 1) - col_idx)
    key = jnp.where(col_ok, key, jnp.int32(-1))          # invalid cols always lose
    key_max = jnp.max(key, axis=-1, keepdims=True)       # (Bt, TN, 1)
    dis_hot = (key == key_max) & col_ok                  # exactly one col when tn >= 1
    d_col = jnp.int32(M - 1) - (key_max & jnp.int32(low_mask))   # argmax column

    # --- sparse BCE ----------------------------------------------------------
    # ali = clamp(dis+gt, 1) is 1 only at the gt column g and the argmax column
    # d of each row; everywhere else BCE(ali*pred, ali*gt) = BCE(0, 0) = 0:
    #   g term (0 <= g < tn):            -log(pred[i, g])
    #   d term (tn > 0 and d != g):      -log(1 - pred[i, d])
    # log terms clamped at -100 as in torch.nn.functional.binary_cross_entropy.
    gt_hot = col_idx == gtc                              # (Bt, TN, M)
    pred_g = jnp.sum(jnp.where(gt_hot, pred, 0.0), axis=-1, keepdims=True)
    pred_d = jnp.sum(jnp.where(dis_hot, pred, 0.0), axis=-1, keepdims=True)

    gt_ok = (gtc >= 0) & (gtc < tn)                      # (Bt, TN, 1)
    d_ok = (tn > 0) & (d_col != gtc)                     # (Bt, TN, 1)
    log_g = jnp.maximum(jnp.log(pred_g), -100.0)
    log_d = jnp.maximum(jnp.log(1.0 - pred_d), -100.0)
    row_loss = jnp.where(gt_ok, -log_g, 0.0) + jnp.where(d_ok, -log_d, 0.0)
    row_loss = jnp.where(row_ok, row_loss, 0.0)          # (Bt, TN, 1)

    # Lane dim is already 1 -> cross-vreg VPU adds + one tiny tree reduce.
    out_ref[...] = jnp.sum(row_loss).reshape(1, 1, 1)


def _divisors(n):
    return [d for d in range(1, n + 1) if n % d == 0]


def ilp_attention_loss(pred_dsmat, gt_perm, src_ns, tgt_ns):
    """JAX/Pallas equivalent of ILP_attention_loss.forward (varied_size=False)."""
    B, N, M = pred_dsmat.shape
    src3 = src_ns.astype(jnp.int32).reshape(B, 1, 1)
    tgt3 = tgt_ns.astype(jnp.int32).reshape(B, 1, 1)

    # gt as per-row column indices (-1 = row has no assignment); the dense gt
    # matrix never enters the kernel.
    gt_f = gt_perm.astype(jnp.float32)
    gt_col = jnp.where(jnp.max(gt_f, axis=-1) > 0.5,
                       jnp.argmax(gt_f, axis=-1).astype(jnp.int32),
                       jnp.int32(-1)).reshape(B, N, 1)

    # --- block sizing: budget double-buffered inputs AND in-kernel temps ----
    try:
        vmem_cap = int(pltpu.get_tpu_info().vmem_capacity_bytes)
    except Exception:
        vmem_cap = 64 * 1024 * 1024                      # v7x per-TensorCore
    n_bufs, n_temps = 2, 8                               # 2x input bufs, ~8 32-bit temps
    bytes_per_elem = n_bufs * pred_dsmat.dtype.itemsize + n_temps * 4
    budget = min(vmem_cap // 4, 16 * 1024 * 1024)        # stay far from physical VMEM
    max_elems = max(M, budget // bytes_per_elem)

    # Row tile must be a multiple of 8 (sublanes) or the full N; batch tile any divisor.
    tn_cands = [d for d in _divisors(N) if d == N or d % 8 == 0]
    tn_fit = [d for d in tn_cands if d * M <= max_elems]
    row_t = max(tn_fit) if tn_fit else min(tn_cands)
    bt_fit = [d for d in _divisors(B) if d * row_t * M <= max_elems]
    bt = max(bt_fit) if bt_fit else 1
    grid_b, grid_n = B // bt, N // row_t

    block_elems = bt * row_t * M
    vmem_need = block_elems * bytes_per_elem + (1 << 20)
    vmem_limit = int(min(vmem_cap, max(2 * vmem_need, 32 * 1024 * 1024)))

    cost = pl.CostEstimate(
        flops=14 * B * N * M,
        transcendentals=2 * B * N,                       # two logs per row
        bytes_accessed=(pred_dsmat.size * pred_dsmat.dtype.itemsize
                        + B * N * 4 + 2 * B * 4 + grid_b * grid_n * 4),
    )

    # NOTE: default double-buffering already hides the HBM stream here; if a
    # sweep shows exposed DMA, add pipeline_mode=pl.Buffered(3) on pred's spec.
    partials = pl.pallas_call(
        _ilp_attn_loss_kernel,
        out_shape=jax.ShapeDtypeStruct((grid_b * grid_n, 1, 1), jnp.float32),
        grid_spec=pltpu.PrefetchScalarGridSpec(
            num_scalar_prefetch=0,
            grid=(grid_b, grid_n),
            in_specs=[
                pl.BlockSpec((bt, 1, 1), lambda g, r: (g, 0, 0)),
                pl.BlockSpec((bt, 1, 1), lambda g, r: (g, 0, 0)),
                pl.BlockSpec((bt, row_t, 1), lambda g, r: (g, r, 0)),
                pl.BlockSpec((bt, row_t, M), lambda g, r: (g, r, 0)),
            ],
            out_specs=pl.BlockSpec((1, 1, 1),
                                   lambda g, r: (g * grid_n + r, 0, 0)),
        ),
        compiler_params=pltpu.CompilerParams(
            dimension_semantics=("parallel", "parallel"),
            vmem_limit_bytes=vmem_limit,
        ),
        cost_estimate=cost,
    )(src3, tgt3, gt_col, pred_dsmat)

    n_sum = jnp.sum(src_ns).astype(jnp.float32)
    return jnp.sum(partials) / n_sum


def _reference_loss(pred, gt, src_ns, tgt_ns):
    """Plain-JAX dense reference (same greedy-argmax ILP stand-in)."""
    pred = pred.astype(jnp.float32)
    gt = gt.astype(jnp.float32)
    B, N, M = pred.shape
    row = jnp.arange(N)[None, :, None]
    col = jnp.arange(M)[None, None, :]
    row_ok = row < src_ns[:, None, None]
    col_ok = col < tgt_ns[:, None, None]
    masked = jnp.where(col_ok, pred, -jnp.inf)
    dis = jax.nn.one_hot(jnp.argmax(masked, axis=-1), M, dtype=jnp.float32)
    dis = dis * (tgt_ns[:, None, None] > 0)
    ali = jnp.minimum(dis + gt, 1.0)
    x = ali * pred
    y = ali * gt
    bce = -(y * jnp.maximum(jnp.log(x), -100.0)
            + (1.0 - y) * jnp.maximum(jnp.log(1.0 - x), -100.0))
    bce = jnp.where(row_ok & col_ok, bce, 0.0)
    return jnp.sum(bce) / jnp.sum(src_ns).astype(jnp.float32)


if __name__ == "__main__":
    key = jax.random.PRNGKey(0)
    B, N, M = 2, 8, 8

    k1, k2 = jax.random.split(key)
    # pred_dsmat: values strictly in (0, 1), like a (soft) doubly-stochastic matrix.
    pred_dsmat = jax.random.uniform(
        k1, (B, N, M), dtype=jnp.float32, minval=0.01, maxval=0.99
    )

    # gt_perm: permutation matrices (exact in bf16 since entries are 0/1),
    # zeroed outside the valid region.
    perm0 = jax.random.permutation(k2, N)
    gt0 = jnp.eye(N, M, dtype=jnp.float32)[perm0]
    gt1 = jnp.eye(N, M, dtype=jnp.float32)          # identity permutation
    gt_perm = jnp.stack([gt0, gt1], axis=0)

    src_ns = jnp.array([8, 6], dtype=jnp.int32)
    tgt_ns = jnp.array([8, 7], dtype=jnp.int32)

    row_idx = jnp.arange(N)[None, :, None]
    col_idx = jnp.arange(M)[None, None, :]
    valid = (row_idx < src_ns[:, None, None]) & (col_idx < tgt_ns[:, None, None])
    gt_perm = jnp.where(valid, gt_perm, 0.0).astype(jnp.bfloat16)

    loss = ilp_attention_loss(pred_dsmat, gt_perm, src_ns, tgt_ns)
    loss = jax.block_until_ready(loss)
    ref = _reference_loss(pred_dsmat, gt_perm, src_ns, tgt_ns)

    assert jnp.isfinite(loss)
    assert jnp.allclose(loss, ref, rtol=1e-3, atol=1e-3), (float(loss), float(ref))
    print("KERNEL_OK")
</pallas_src>

<mosaic_0001>
module attributes {stable_mosaic.version = 11 : i64} {
  func.func @_ilp_attn_loss_kernel(%arg0: i32, %arg1: i32, %arg2: memref<2x1x1xi32, #tpu.memory_space<vmem>>, %arg3: memref<2x1x1xi32, #tpu.memory_space<vmem>>, %arg4: memref<2x8x1xi32, #tpu.memory_space<vmem>>, %arg5: memref<2x8x8xf32, #tpu.memory_space<vmem>>, %arg6: memref<1x1x1xf32, #tpu.memory_space<vmem>>) attributes {dimension_semantics = [#tpu.dimension_semantics<parallel>, #tpu.dimension_semantics<parallel>], iteration_bounds = array<i64: 1, 1>, scalar_prefetch = 0 : i64, scratch_operands = 0 : i64, tpu.core_type = #tpu.core_type<tc>, window_params = [{transform_indices = @transform_0, window_bounds = array<i64: 2, 1, 1>}, {transform_indices = @transform_1, window_bounds = array<i64: 2, 1, 1>}, {transform_indices = @transform_2, window_bounds = array<i64: 2, 8, 1>}, {transform_indices = @transform_3, window_bounds = array<i64: 2, 8, 8>}, {transform_indices = @transform_4, window_bounds = array<i64: 1, 1, 1>}]} {
    %c0 = arith.constant 0 : index
    %c0_0 = arith.constant 0 : index
    %c0_1 = arith.constant 0 : index
    %0 = vector.load %arg5[%c0, %c0_0, %c0_1] : memref<2x8x8xf32, #tpu.memory_space<vmem>>, vector<2x8x8xf32>
    %c0_2 = arith.constant 0 : index
    %c0_3 = arith.constant 0 : index
    %c0_4 = arith.constant 0 : index
    %1 = vector.load %arg2[%c0_2, %c0_3, %c0_4] : memref<2x1x1xi32, #tpu.memory_space<vmem>>, vector<2x1x1xi32>
    %c0_5 = arith.constant 0 : index
    %c0_6 = arith.constant 0 : index
    %c0_7 = arith.constant 0 : index
    %2 = vector.load %arg3[%c0_5, %c0_6, %c0_7] : memref<2x1x1xi32, #tpu.memory_space<vmem>>, vector<2x1x1xi32>
    %c0_8 = arith.constant 0 : index
    %c0_9 = arith.constant 0 : index
    %c0_10 = arith.constant 0 : index
    %3 = vector.load %arg4[%c0_8, %c0_9, %c0_10] : memref<2x8x1xi32, #tpu.memory_space<vmem>>, vector<2x8x1xi32>
    %c8_i32 = arith.constant 8 : i32
    %4 = arith.muli %arg1, %c8_i32 : i32
    %5 = tpu.iota {dimensions = array<i32: 1>} : vector<1x8x1xi32>
    %6 = vector.broadcast %4 : i32 to vector<1x8x1xi32>
    %7 = arith.addi %6, %5 : vector<1x8x1xi32>
    %8 = tpu.iota {dimensions = array<i32: 2>} : vector<1x1x8xi32>
    %9 = vector.broadcast %7 : vector<1x8x1xi32> to vector<2x8x1xi32>
    %10 = vector.broadcast %1 : vector<2x1x1xi32> to vector<2x8x1xi32>
    %11 = arith.cmpi slt, %9, %10 : vector<2x8x1xi32>
    %12 = vector.broadcast %8 : vector<1x1x8xi32> to vector<2x1x8xi32>
    %13 = vector.broadcast %2 : vector<2x1x1xi32> to vector<2x1x8xi32>
    %14 = arith.cmpi slt, %12, %13 : vector<2x1x8xi32>
    %15 = tpu.bitcast %0 : vector<2x8x8xf32> -> vector<2x8x8xi32>
    %c-8_i32 = arith.constant -8 : i32
    %16 = vector.broadcast %c-8_i32 : i32 to vector<2x8x8xi32>
    %17 = arith.andi %15, %16 : vector<2x8x8xi32>
    %c7_i32 = arith.constant 7 : i32
    %18 = vector.broadcast %c7_i32 : i32 to vector<1x1x8xi32>
    %19 = arith.subi %18, %8 : vector<1x1x8xi32>
    %20 = vector.broadcast %19 : vector<1x1x8xi32> to vector<2x8x8xi32>
    %21 = arith.ori %17, %20 : vector<2x8x8xi32>
    %c-1_i32 = arith.constant -1 : i32
    %22 = vector.shape_cast %14 : vector<2x1x8xi1> to vector<2x1x8xi1>
    %23 = vector.broadcast %22 : vector<2x1x8xi1> to vector<2x8x8xi1>
    %24 = vector.broadcast %c-1_i32 : i32 to vector<2x8x8xi32>
    %25 = arith.select %23, %21, %24 : vector<2x8x8xi1>, vector<2x8x8xi32>
    %cst = arith.constant dense<-2147483648> : vector<2x8xi32>
    %26 = vector.multi_reduction <maxsi>, %25, %cst [2] : vector<2x8x8xi32> to vector<2x8xi32>
    %27 = vector.shape_cast %26 : vector<2x8xi32> to vector<2x8x1xi32>
    %28 = vector.broadcast %27 : vector<2x8x1xi32> to vector<2x8x8xi32>
    %29 = arith.cmpi eq, %25, %28 : vector<2x8x8xi32>
    %30 = vector.broadcast %14 : vector<2x1x8xi1> to vector<2x8x8xi1>
    %31 = arith.andi %29, %30 : vector<2x8x8xi1>
    %c7_i32_11 = arith.constant 7 : i32
    %32 = vector.broadcast %c7_i32_11 : i32 to vector<2x8x1xi32>
    %33 = arith.andi %27, %32 : vector<2x8x1xi32>
    %c7_i32_12 = arith.constant 7 : i32
    %34 = vector.broadcast %c7_i32_12 : i32 to vector<2x8x1xi32>
    %35 = arith.subi %34, %33 : vector<2x8x1xi32>
    %36 = vector.broadcast %8 : vector<1x1x8xi32> to vector<2x8x8xi32>
    %37 = vector.broadcast %3 : vector<2x8x1xi32> to vector<2x8x8xi32>
    %38 = arith.cmpi eq, %36, %37 : vector<2x8x8xi32>
    %cst_13 = arith.constant 0.000000e+00 : f32
    %39 = vector.broadcast %cst_13 : f32 to vector<2x8x8xf32>
    %40 = arith.select %38, %0, %39 : vector<2x8x8xi1>, vector<2x8x8xf32>
    %cst_14 = arith.constant dense<0.000000e+00> : vector<2x8xf32>
    %41 = vector.multi_reduction <add>, %40, %cst_14 [2] : vector<2x8x8xf32> to vector<2x8xf32>
    %42 = vector.shape_cast %41 : vector<2x8xf32> to vector<2x8x1xf32>
    %cst_15 = arith.constant 0.000000e+00 : f32
    %43 = vector.broadcast %cst_15 : f32 to vector<2x8x8xf32>
    %44 = arith.select %31, %0, %43 : vector<2x8x8xi1>, vector<2x8x8xf32>
    %cst_16 = arith.constant dense<0.000000e+00> : vector<2x8xf32>
    %45 = vector.multi_reduction <add>, %44, %cst_16 [2] : vector<2x8x8xf32> to vector<2x8xf32>
    %46 = vector.shape_cast %45 : vector<2x8xf32> to vector<2x8x1xf32>
    %c0_i32 = arith.constant 0 : i32
    %47 = vector.broadcast %c0_i32 : i32 to vector<2x8x1xi32>
    %48 = arith.cmpi sge, %3, %47 : vector<2x8x1xi32>
    %49 = vector.broadcast %2 : vector<2x1x1xi32> to vector<2x8x1xi32>
    %50 = arith.cmpi slt, %3, %49 : vector<2x8x1xi32>
    %51 = arith.andi %48, %50 : vector<2x8x1xi1>
    %c0_i32_17 = arith.constant 0 : i32
    %52 = vector.broadcast %c0_i32_17 : i32 to vector<2x1x1xi32>
    %53 = arith.cmpi sgt, %2, %52 : vector<2x1x1xi32>
    %54 = arith.cmpi ne, %35, %3 : vector<2x8x1xi32>
    %55 = vector.broadcast %53 : vector<2x1x1xi1> to vector<2x8x1xi1>
    %56 = arith.andi %55, %54 : vector<2x8x1xi1>
    %57 = math.log %42 : vector<2x8x1xf32>
    %cst_18 = arith.constant -1.000000e+02 : f32
    %58 = vector.broadcast %cst_18 : f32 to vector<2x8x1xf32>
    %59 = arith.maximumf %57, %58 : vector<2x8x1xf32>
    %cst_19 = arith.constant 1.000000e+00 : f32
    %60 = vector.broadcast %cst_19 : f32 to vector<2x8x1xf32>
    %61 = arith.subf %60, %46 : vector<2x8x1xf32>
    %62 = math.log %61 : vector<2x8x1xf32>
    %cst_20 = arith.constant -1.000000e+02 : f32
    %63 = vector.broadcast %cst_20 : f32 to vector<2x8x1xf32>
    %64 = arith.maximumf %62, %63 : vector<2x8x1xf32>
    %cst_21 = arith.constant 0.000000e+00 : f32
    %65 = vector.broadcast %cst_21 : f32 to vector<2x8x1xf32>
    %66 = arith.subf %65, %59 : vector<2x8x1xf32>
    %cst_22 = arith.constant 0.000000e+00 : f32
    %67 = vector.broadcast %cst_22 : f32 to vector<2x8x1xf32>
    %68 = arith.select %51, %66, %67 : vector<2x8x1xi1>, vector<2x8x1xf32>
    %cst_23 = arith.constant 0.000000e+00 : f32
    %69 = vector.broadcast %cst_23 : f32 to vector<2x8x1xf32>
    %70 = arith.subf %69, %64 : vector<2x8x1xf32>
    %cst_24 = arith.constant 0.000000e+00 : f32
    %71 = vector.broadcast %cst_24 : f32 to vector<2x8x1xf32>
    %72 = arith.select %56, %70, %71 : vector<2x8x1xi1>, vector<2x8x1xf32>
    %73 = arith.addf %68, %72 : vector<2x8x1xf32>
    %cst_25 = arith.constant 0.000000e+00 : f32
    %74 = vector.broadcast %cst_25 : f32 to vector<2x8x1xf32>
    %75 = arith.select %11, %73, %74 : vector<2x8x1xi1>, vector<2x8x1xf32>
    %76 = vector.shape_cast %75 : vector<2x8x1xf32> to vector<1x2x8x1xf32>
    %cst_26 = arith.constant dense<0.000000e+00> : vector<1xf32>
    %77 = vector.multi_reduction <add>, %76, %cst_26 [1, 2, 3] : vector<1x2x8x1xf32> to vector<1xf32>
    %78 = vector.shape_cast %77 : vector<1xf32> to vector<1x1x1x1xf32>
    %79 = vector.extract %78[0, 0, 0, 0] : f32 from vector<1x1x1x1xf32>
    %80 = vector.broadcast %79 : f32 to vector<1x1x1xf32>
    %c0_27 = arith.constant 0 : index
    %c0_28 = arith.constant 0 : index
    %c0_29 = arith.constant 0 : index
    %81 = vector.load %arg6[%c0_27, %c0_28, %c0_29] : memref<1x1x1xf32, #tpu.memory_space<vmem>>, vector<1x1x1xf32>
    tpu.vector_store %arg6[%c0_27, %c0_28, %c0_29], %80 {strides = array<i32>} : memref<1x1x1xf32, #tpu.memory_space<vmem>>, vector<1x1x1xf32>,
    return
  }
  func.func @transform_0(%arg0: i32, %arg1: i32) -> (i32, i32, i32) {
    %c0_i32 = arith.constant 0 : i32
    %c0_i32_0 = arith.constant 0 : i32
    %c0_i32_1 = arith.constant 0 : i32
    return %arg0, %c0_i32, %c0_i32_0 : i32, i32, i32
  }
  func.func @transform_1(%arg0: i32, %arg1: i32) -> (i32, i32, i32) {
    %c0_i32 = arith.constant 0 : i32
    %c0_i32_0 = arith.constant 0 : i32
    %c0_i32_1 = arith.constant 0 : i32
    return %arg0, %c0_i32, %c0_i32_0 : i32, i32, i32
  }
  func.func @transform_2(%arg0: i32, %arg1: i32) -> (i32, i32, i32) {
    %c0_i32 = arith.constant 0 : i32
    %c0_i32_0 = arith.constant 0 : i32
    return %arg0, %arg1, %c0_i32 : i32, i32, i32
  }
  func.func @transform_3(%arg0: i32, %arg1: i32) -> (i32, i32, i32) {
    %c0_i32 = arith.constant 0 : i32
    %c0_i32_0 = arith.constant 0 : i32
    return %arg0, %arg1, %c0_i32 : i32, i32, i32
  }
  func.func @transform_4(%arg0: i32, %arg1: i32) -> (i32, i32, i32) {
    %c1_i32 = arith.constant 1 : i32
    %0 = arith.muli %arg0, %c1_i32 : i32
    %1 = arith.addi %0, %arg1 : i32
    %c0_i32 = arith.constant 0 : i32
    %c0_i32_0 = arith.constant 0 : i32
    %c0_i32_1 = arith.constant 0 : i32
    return %1, %c0_i32, %c0_i32_0 : i32, i32, i32
  }
}

</mosaic_0001>

<bundles_post_ra>
// kernel: tpu_custom_call.1
= control target key start
LH: loop header
LB: loop body
LE: loop exit
PB: predicated region body
PF: predicated region fallthrough
CT: control target
= control target key end

     0   :  { %v265_v2 = vmov 0   ;;  %s411_s0 = inlined_call_operand.vmem [shape: s32[2,1,1], index: 0, kind: input, shape index: {}]   ;;  %s412_s1 = inlined_call_operand.vmem [shape: s32[2,1,1], index: 1, kind: input, shape index: {}]   ;;  %s413_s2 = inlined_call_operand.vmem [shape: s32[2,8,1], index: 2, kind: input, shape index: {}]   ;;  %s414_s3 = inlined_call_operand.vmem [shape: f32[2,8,8], index: 3, kind: input, shape index: {}]   ;;  %s415_s4 = inlined_call_operand.hbm [shape: f32[1,1,1], index: 4, kind: output, shape index: {}]  }
   0x1   :  { %v295_v0 = vld [vmem:[%s412_s1] sm:$0x1]  ;;  %v300_v1 = vld [vmem:[%s412_s1 + $0x1] sm:$0x1]  ;;  %233 = vset.pattern.permute.xlu0 %v265_v2  ;;  %234 = vset.pattern.permute.xlu1 %v265_v2 }
   0x2   :  { %vm150_vm0 = vcmp.gt.s32.totalorder %v295_v0, 0  ;;  %vm151_vm1 = vcmp.gt.s32.totalorder %v300_v1, 0  ;;  %45 = vperm.xlu0 %233, %v295_v0  }
   0x3   :  { %v305_v3 = vsel %vm150_vm0, 1, %v265_v2  ;;  %v307_v4 = vsel %vm151_vm1, 1, %v265_v2 }
   0x4   :  { %9 = vsyncpa [#allocation3], 0  ;;  %v28_v5 = vlaneseq  ;;  %v317_v8 = vld [vmem:[%s414_s3] sm:$0xff]  ;;  %v327_v12 = vld [vmem:[%s414_s3 + $0x8] sm:$0xff]  ;;  %vm73_vm2 = vcmask 64512  }
   0x5   :  { %v62_v10 = vand.u32 4294967288, %v317_v8  ;;  %v63_v15 = vand.u32 4294967288, %v327_v12  ;;  %v351_v30 = vld [vmem:[%s413_s2] sm:$0xff]  ;;  %v360_v42 = vld [vmem:[%s413_s2 + $0x8] sm:$0xff] }
   0x6   :  { %52 = vperm.xlu0 %233, %v300_v1   ;;  %v310_v6 = vand.u32 127, %v28_v5  ;;  %v312_v7 = vshrl.u32 %v28_v5, 7 }
   0x8   :  { %v64_v9 = vsub.s32 7, %v310_v6  ;;  %v322_v11 = vsub.s32 0, %v312_v7 }
   0xa   :  { %v65_v14 = vor.u32 %v64_v9, %v62_v10  ;;  %v66_v20 = vor.u32 %v64_v9, %v63_v15  ;;  %v159_v49 = vrot.slane %v305_v3, %v322_v11  ;;  %v163_v54 = vrot.slane %v307_v4, %v322_v11 }
   0xc   :  { %vm164_vm10 = vcmp.eq.s32.totalorder %v159_v49, 1  ;;  %vm165_vm15 = vcmp.eq.s32.totalorder %v163_v54, 1 }
  0x7d   :  { %v46_v13 = vpop.permute.xlu0 %45 }
  0x7e   :  { %v50_v16 = vrot.slane %v46_v13, %v322_v11 }
  0x80   :  { %vm332_vm3 = vcmp.lt.s32.totalorder %v310_v6, %v50_v16 }
  0x81   :  { %v71_v18 = vsel %vm332_vm3, %v65_v14, 4294967295  ;;  %v53_v19 = vpop.permute.xlu0 %52 }
  0x82   :  { %v57_v21 = vrot.slane %v53_v19, %v322_v11  ;;  %v74_v22 = vsel %vm73_vm2, %v71_v18, 2147483648 }
  0x83   :  { %v76_v23 = vshra.s32 %v74_v22, 16  ;;  %v75_v31 = vand.u32 65535, %v74_v22 }
  0x84   :  { %vm341_vm4 = vcmp.lt.s32.totalorder %v310_v6, %v57_v21 }
  0x85   :  { %v72_v25 = vsel %vm341_vm4, %v66_v20, 4294967295  ;;  %v78_v26 = vcvt.s32.f32 %v76_v23  ;;  %v77_v33 = vcvt.s32.f32 %v75_v31  ;;  %v145_v20 = vrot.slane %v300_v1, %v322_v11  ;;  %v227_v1 = vld [vmem:[%s411_s0] ss:$0 sm:$0xff] }
  0x86   :  { %v89_v27 = vsel %vm73_vm2, %v72_v25, 2147483648 }
  0x87   :  { %79 = vmax.xlane.f32.xlu1 %v78_v26  ;;  %v91_v28 = vshra.s32 %v89_v27, 16  ;;  %v90_v34 = vand.u32 65535, %v89_v27 }
  0x89   :  { %v93_v29 = vcvt.s32.f32 %v91_v28  ;;  %v92_v37 = vcvt.s32.f32 %v90_v34 }
  0x8b   :  { %94 = vmax.xlane.f32.xlu1 %v93_v29 }
  0x9c   :  { %113 = vperm.xlu1 %234, %v351_v30  }
 0x110   :  { %v80_v32 = vpop.xlane.xlu1 %79 }
 0x111   :  { %vm81_vm5 = vcmp.eq.f32.partialorder %v78_v26, %v80_v32  ;;  %v86_v43 = vcvt.f32.s32 %v80_v32  ;;  %v228_v32 = vld [vmem:[%s411_s0 + $0x1] ss:$0 sm:$0xff]  ;;  %s266_s0 = smov [#allocation2]  }
 0x112   :  { %v82_v35 = vsel %vm81_vm5, %v77_v33, -inf  ;;  %s219_s28 = sshll.u32 %s266_s0, 4  ;;  %s220_s28 = int_to_ptr.vmem [resolvable:$true] %s219_s28 }
 0x113   :  { %83 = vmax.xlane.f32.xlu0 %v82_v35  ;;  %v87_v45 = vshll.u32 %v86_v43, 16  ;;  %s243_s30 = scalar_lea.vmem %s220_s28, 16  ;;  %s247_s5 = scalar_lea.vmem %s220_s28, 32 }
 0x114   :  { %v95_v36 = vpop.xlane.xlu1 %94  ;;  %p244_p0 = scmp.ne.s32.totalorder %s220_s28, %s243_s30  ;;  %p248_p1 = scmp.lt.s32.totalorder %s220_s28, %s220_s28 }
 0x115   :  { %vm96_vm6 = vcmp.eq.f32.partialorder %v93_v29, %v95_v36  ;;  %v101_v46 = vcvt.f32.s32 %v95_v36  ;;  %p249_p2 = scmp.lt.s32.totalorder %s247_s5, %s243_s30 }
 0x116   :  { %v97_v38 = vsel %vm96_vm6, %v92_v37, -inf  ;;  %vm137_vm6 = vcmp.ge.s32.totalorder %v360_v42, 0 }
 0x117   :  { %98 = vmax.xlane.f32.xlu1 %v97_v38  ;;  %v102_v51 = vshll.u32 %v101_v46, 16  ;;  %p250_p3 = por %p249_p2, %p248_p1 }
 0x118   :  { %v114_v39 = vpop.permute.xlu1 %113 }
 0x119   :  { %vm118_vm7 = vcmp.eq.s32.totalorder %v310_v6, %v114_v39  ;;  %p251_p4 = pnand %p250_p3, %p244_p0 }
 0x11a   :  { %v120_v40 = vsel %vm118_vm7, %v317_v8, 0.0  ;;  %vm147_vm7 = vcmp.lt.s32.totalorder %v360_v42, %v145_v20 }
 0x11b   :  { %v122_v41 = vsel %vm73_vm2, %v120_v40, 0.0 }
 0x11c   :  { %123 = vadd.xlane.f32.xlu0 %v122_v41 }
 0x128   :  { %116 = vperm.xlu1 %234, %v360_v42  }
 0x19c   :  { %v84_v44 = vpop.xlane.xlu0 %83 }
 0x19d   :  { %v85_v47 = vcvt.f32.s32 %v84_v44 }
 0x19f   :  { %v88_v48 = vadd.s32 %v87_v45, %v85_v47 }
 0x1a0   :  { %v99_v50 = vpop.xlane.xlu1 %98 }
 0x1a1   :  { %v108_v52 = vand.u32 7, %v88_v48  ;;  %v100_v53 = vcvt.f32.s32 %v99_v50  ;;  %vm104_vm8 = vcmp.eq.s32.totalorder %v71_v18, %v88_v48 }
 0x1a2   :  { %vm106_vm9 = vmand %vm104_vm8, %vm332_vm3 }
 0x1a3   :  { %v110_v55 = vsub.s32 7, %v108_v52  ;;  %v103_v56 = vadd.s32 %v102_v51, %v100_v53  ;;  %v128_v57 = vsel %vm106_vm9, %v317_v8, 0.0  ;;  %vm149_vm8 = vmand %vm137_vm6, %vm147_vm7  ;;  %vm42_vm9 = vcmp.lt.s32.totalorder %v312_v7, %v227_v1 }
 0x1a4   :  { %v117_v58 = vpop.permute.xlu1 %116  ;;  %v130_v59 = vsel %vm73_vm2, %v128_v57, 0.0 }
 0x1a5   :  { %vm152_vm11 = vcmp.ne.s32.totalorder %v110_v55, %v351_v30  ;;  %v109_v60 = vand.u32 7, %v103_v56  ;;  %131 = vadd.xlane.f32.xlu1 %v130_v59  ;;  %vm105_vm12 = vcmp.eq.s32.totalorder %v72_v25, %v103_v56  ;;  %vm119_vm13 = vcmp.eq.s32.totalorder %v310_v6, %v117_v58  ;;  %v124_v6 = vpop.xlane.xlu0 %123 }
 0x1a6   :  { %vm107_vm14 = vmand %vm105_vm12, %vm341_vm4  ;;  %v121_v3 = vsel %vm119_vm13, %v327_v12, 0.0  ;;  %235 = vlog2.f32 %v124_v6  ;;  %vm208_vm12 = vcmask 0  }
 0x1a7   :  { %v111_v61 = vsub.s32 7, %v109_v60  ;;  %v129_v62 = vsel %vm107_vm14, %v327_v12, 0.0  ;;  %vm376_vm0 = vmand %vm164_vm10, %vm152_vm11  ;;  %v125_v5 = vsel %vm73_vm2, %v121_v3, 0.0  ;;  %v141_v12 = vrot.slane %v295_v0, %v322_v11 }
 0x1a8   :  { %v133_v2 = vsel %vm73_vm2, %v129_v62, 0.0  ;;  %vm136_vm2 = vcmp.ge.s32.totalorder %v351_v30, 0  ;;  %vm43_vm10 = vcmp.lt.s32.totalorder %v312_v7, %v228_v32  ;;  %vm194_vm11 = vcmask 7168  }
 0x1a9   :  { %vm153_vm1 = vcmp.ne.s32.totalorder %v111_v61, %v360_v42  ;;  %134 = vadd.xlane.f32.xlu0 %v133_v2  ;;  %vm146_vm4 = vcmp.lt.s32.totalorder %v351_v30, %v141_v12 }
 0x1aa   :  { %vm383_vm3 = vmand %vm165_vm15, %vm153_vm1 }
 0x1ab   :  { %vm148_vm5 = vmand %vm136_vm2, %vm146_vm4 }
 0x1ad   :  { %126 = vadd.xlane.f32.xlu0 %v125_v5 }
 0x1b3   :  { %v236_v14 = vpop.eup %235 }
 0x1b4   :  { %v169_v16 = vmul.f32 0.6931472, %v236_v14 }
 0x1b6   :  { %v172_v17 = vmax.f32 %v169_v16, -100.0 }
 0x1b8   :  { %v182_v21 = vsub.f32 0.0, %v172_v17 }
 0x1ba   :  { %v184_v28 = vsel %vm148_vm5, %v182_v21, 0.0 }
 0x22e   :  { %v132_v8 = vpop.xlane.xlu1 %131 }
 0x22f   :  { %v174_v9 = vsub.f32 1.0, %v132_v8 }
 0x231   :  { %237 = vlog2.f32 %v174_v9 }
 0x232   :  { %v135_v10 = vpop.xlane.xlu0 %134 }
 0x233   :  { %v175_v13 = vsub.f32 1.0, %v135_v10 }
 0x235   :  { %239 = vlog2.f32 %v175_v13 }
 0x236   :  { %v127_v15 = vpop.xlane.xlu0 %126 }
 0x237   :  { %241 = vlog2.f32 %v127_v15 }
 0x23e   :  { %v238_v18 = vpop.eup %237 }
 0x23f   :  { %v177_v19 = vmul.f32 0.6931472, %v238_v18 }
 0x241   :  { %v180_v22 = vmax.f32 %v177_v19, -100.0 }
 0x242   :  { %v240_v23 = vpop.eup %239 }
 0x243   :  { %v186_v24 = vsub.f32 0.0, %v180_v22  ;;  %v179_v25 = vmul.f32 0.6931472, %v240_v23 }
 0x244   :  { %v242_v26 = vpop.eup %241 }
 0x245   :  { %v181_v0 = vmax.f32 %v179_v25, -100.0  ;;  %v171_v27 = vmul.f32 0.6931472, %v242_v26  ;;  %v188_v29 = vsel %vm376_vm0, %v186_v24, 0.0 }
 0x246   :  { %v190_v11 = vadd.f32 %v188_v29, %v184_v28 }
 0x247   :  { %v187_v30 = vsub.f32 0.0, %v181_v0  ;;  %v173_v31 = vmax.f32 %v171_v27, -100.0 }
 0x248   :  { %v192_v37 = vsel %vm42_vm9, %v190_v11, 0.0 }
 0x249   :  { %v183_v33 = vsub.f32 0.0, %v173_v31  ;;  %v189_v35 = vsel %vm383_vm3, %v187_v30, 0.0  ;;  %v195_v39 = vsel %vm194_vm11, %v192_v37, 0.0 }
 0x24b   :  { %v185_v34 = vsel %vm149_vm8, %v183_v33, 0.0 }
 0x24c   :  { %v191_v36 = vadd.f32 %v189_v35, %v185_v34 }
 0x24e   :  { %v193_v38 = vsel %vm43_vm10, %v191_v36, 0.0 }
 0x24f   :  { %v196_v40 = vsel %vm194_vm11, %v193_v38, 0.0 }
 0x250   :  { %v197_v41 = vadd.f32 %v196_v40, %v195_v39 }
 0x252   :  { %198 = vadd.xlane.f32.xlu0 %v197_v41 }
 0x2db   :  { %v199_v42 = vpop.xlane.xlu0 %198 }
 0x2dc   :  { %v200_v43 = vrot.slane %v199_v42, 4 }
 0x2de   :  { %v201_v44 = vadd.f32 %v200_v43, %v199_v42 }
 0x2e0   :  { %v202_v45 = vrot.slane %v201_v44, 2 }
 0x2e2   :  { %v203_v46 = vadd.f32 %v202_v45, %v201_v44 }
 0x2e4   :  { %v204_v47 = vrot.slane %v203_v46, 1 }
 0x2e6   :  { %v205_v48 = vadd.f32 %v204_v47, %v203_v46 }
 0x2e8   :  { %229 = vpush %v205_v48 }
 0x319   :  { %s230_s29 = spop %229 }
 0x31a   :  { %v207_v7 = vstv %s230_s29 }
 0x31b   :  { %209 = vst.msk [vmem:[#allocation2] sm:$0x1] %vm208_vm12, %v207_v7 }
 0x31c   :  { %254 = shalt.err (!%p251_p4)
}
 0x31d   :  { %222 = dma.vmem_to_hbm [thread:$0]  %s220_s28, 16, %s415_s4, [#allocation3]  }
 0x31e   :  { %263 = dma.done.wait [#allocation3], 16  }
 0x31f   :  { %264 = vsyncadd [#allocation3], 4294967280 }
 0x320   :  { %226 = vsyncpa [#allocation3], 1 }

</bundles_post_ra>
